<compile_context>
chip_gen: v6e
topology: v6e:2x2x1
jax: 0.10.0
libtpu: 0.0.40
codegen_flags: <defaults>
</compile_context>

<pallas_src>
import math
from functools import partial

import numpy as np

import jax
import jax.numpy as jnp
from jax import lax
from jax.experimental import pallas as pl
from jax.experimental.pallas import tpu as pltpu

_LANE = 128
# log((1 - 1e-7) / 1e-7): clamping logits to +/- this value reproduces the
# reference's clip of probabilities to [1e-7, 1 - 1e-7] before the log terms.
_LOGIT_CLAMP = 16.118095


def _bce_with_logits(z, t):
    """Stable BCE on logits; matches BCE(clip(sigmoid(z), 1e-7, 1-1e-7), t)."""
    zc = jnp.clip(z, -_LOGIT_CLAMP, _LOGIT_CLAMP)
    return jnp.maximum(zc, 0.0) - t * zc + jnp.log(1.0 + jnp.exp(-jnp.abs(zc)))


# ----------------------------------------------------------------------------
# Pallas kernel: decode pred boxes + division-free ignore test + conf BCE sums
# ----------------------------------------------------------------------------
def _make_dense_conf_kernel(ignore_threshold, max_gt, tile_rows):
    thr = float(ignore_threshold)
    one_p_thr = 1.0 + thr

    def kernel(pred_ref, shared_ref, mask_ref, gt_ref, out_ref):
        # pred_ref  : (5, TR, 128)   x_logit, y_logit, w_logit, h_logit, conf_logit
        # shared_ref: (4, TR, 128)   grid_x, grid_y, anchor_w, anchor_h (batch-shared)
        # mask_ref  : (2, TR, 128)   obj, noobj0
        # gt_ref    : SMEM (bs, max_gt*5)   x1, y1, x2, y2, thr*area (huge if pad)
        # out_ref   : (8, 128)       row0: conf BCE sum, row1: conf mask count
        f32 = jnp.float32
        b = pl.program_id(0)
        t = pl.program_id(1)

        @pl.when(t == 0)
        def _():
            out_ref[...] = jnp.zeros_like(out_ref)

        # --- decode predicted boxes (w/h decode folded into the kernel) -------
        pbx = jax.nn.sigmoid(pred_ref[0]) + shared_ref[0]
        pby = jax.nn.sigmoid(pred_ref[1]) + shared_ref[1]
        pbw = jnp.exp(pred_ref[2]) * shared_ref[2]
        pbh = jnp.exp(pred_ref[3]) * shared_ref[3]

        b_x1 = pbx - pbw * 0.5
        b_x2 = pbx + pbw * 0.5
        b_y1 = pby - pbh * 0.5
        b_y2 = pby + pbh * 0.5
        thr_area_b = (pbw * pbh) * thr

        # --- get_ignore: division-free "IoU > thr" running hit over GT table --
        def gt_body(t_i, hit):
            base = t_i * 5
            a_x1 = gt_ref[b, base + 0]
            a_y1 = gt_ref[b, base + 1]
            a_x2 = gt_ref[b, base + 2]
            a_y2 = gt_ref[b, base + 3]
            thr_area_a = gt_ref[b, base + 4]     # = thr*area_gt, huge if padded
            iw = jnp.maximum(jnp.minimum(a_x2, b_x2) - jnp.maximum(a_x1, b_x1), 0.0)
            ih = jnp.maximum(jnp.minimum(a_y2, b_y2) - jnp.maximum(a_y1, b_y1), 0.0)
            inter = iw * ih
            cond = inter * one_p_thr > thr_area_a + thr_area_b
            return jnp.maximum(hit, cond.astype(f32))

        hit = lax.fori_loop(0, max_gt, gt_body,
                            jnp.zeros((tile_rows, _LANE), f32),
                            unroll=bool(max_gt <= 8))

        obj = mask_ref[0]
        noobj = jnp.where(hit > 0.5, 0.0, mask_ref[1])
        conf_mask = jnp.maximum(noobj, obj)      # noobj | obj (both in {0,1})

        conf_bce = _bce_with_logits(pred_ref[4], obj) * conf_mask
        out_ref[0:1, :] += jnp.sum(conf_bce, axis=0, keepdims=True)
        out_ref[1:2, :] += jnp.sum(conf_mask, axis=0, keepdims=True)

    return kernel


# ----------------------------------------------------------------------------
# Single jitted device function: dense kernel + sparse GT-cell path + combine
# ----------------------------------------------------------------------------
@partial(jax.jit, static_argnames=(
    "na", "A", "in_h", "in_w", "tile_rows", "n_tiles", "max_gt", "num_classes",
    "box_ratio", "obj_ratio", "cls_ratio", "balance_l", "ignore_threshold"))
def _yolo_loss_device(inp, shared4, masks4, gt_tab,
                      cell_b, cell_k, cell_j, cell_i, cell_anchor,
                      cell_ytrue, cell_valid,
                      *, na, A, in_h, in_w, tile_rows, n_tiles, max_gt,
                      num_classes, box_ratio, obj_ratio, cls_ratio,
                      balance_l, ignore_threshold):
    bs = inp.shape[0]
    Nb = na * in_h * in_w
    nb_rows_p = n_tiles * tile_rows
    pad = nb_rows_p * _LANE - Nb

    pred5 = inp.reshape(bs, na, A, in_h, in_w)

    # ---- dense conf path: only the 5 box/conf attributes, [batch, attr, cell]
    pred_d = pred5[:, :, :5].transpose(0, 2, 1, 3, 4).reshape(bs, 5, Nb)
    pred_d = jnp.pad(pred_d, ((0, 0), (0, 0), (0, pad)))
    pred_d = pred_d.reshape(bs, 5, nb_rows_p, _LANE)

    kernel = _make_dense_conf_kernel(ignore_threshold, max_gt, tile_rows)
    out = pl.pallas_call(
        kernel,
        out_shape=jax.ShapeDtypeStruct((bs, 8, _LANE), jnp.float32),
        grid=(bs, n_tiles),
        in_specs=[
            pl.BlockSpec((None, 5, tile_rows, _LANE), lambda b, t: (b, 0, t, 0)),
            pl.BlockSpec((4, tile_rows, _LANE), lambda b, t: (0, t, 0)),
            pl.BlockSpec((None, 2, tile_rows, _LANE), lambda b, t: (b, 0, t, 0)),
            pl.BlockSpec(memory_space=pltpu.MemorySpace.SMEM),
        ],
        out_specs=pl.BlockSpec((None, 8, _LANE), lambda b, t: (b, 0, 0)),
        compiler_params=pltpu.CompilerParams(
            dimension_semantics=("parallel", "arbitrary")),
    )(pred_d, shared4, masks4, gt_tab)

    conf_sum = jnp.sum(out[:, 0, :])
    conf_cnt = jnp.sum(out[:, 1, :])

    # ---- sparse GT-cell path: loc CIoU + class BCE on the few obj cells ------
    g = pred5[cell_b, cell_k, :, cell_j, cell_i]          # (n_pad, A) gather
    px = jax.nn.sigmoid(g[:, 0]) + cell_i.astype(jnp.float32)
    py = jax.nn.sigmoid(g[:, 1]) + cell_j.astype(jnp.float32)
    pw = jnp.exp(g[:, 2]) * cell_anchor[:, 0]
    ph = jnp.exp(g[:, 3]) * cell_anchor[:, 1]

    tx, ty = cell_ytrue[:, 0], cell_ytrue[:, 1]
    tw, th = cell_ytrue[:, 2], cell_ytrue[:, 3]

    b1_x1, b1_x2 = px - pw * 0.5, px + pw * 0.5
    b1_y1, b1_y2 = py - ph * 0.5, py + ph * 0.5
    b2_x1, b2_x2 = tx - tw * 0.5, tx + tw * 0.5
    b2_y1, b2_y2 = ty - th * 0.5, ty + th * 0.5
    iw = jnp.maximum(jnp.minimum(b1_x2, b2_x2) - jnp.maximum(b1_x1, b2_x1), 0.0)
    ih = jnp.maximum(jnp.minimum(b1_y2, b2_y2) - jnp.maximum(b1_y1, b2_y1), 0.0)
    inter = iw * ih
    union = pw * ph + tw * th - inter
    iou = inter / jnp.maximum(union, 1e-6)
    center_d = (px - tx) ** 2 + (py - ty) ** 2
    ew = jnp.maximum(jnp.maximum(b1_x2, b2_x2) - jnp.minimum(b1_x1, b2_x1), 0.0)
    eh = jnp.maximum(jnp.maximum(b1_y2, b2_y2) - jnp.minimum(b1_y1, b2_y1), 0.0)
    e_diag = ew * ew + eh * eh
    ciou = iou - center_d / jnp.maximum(e_diag, 1e-6)
    d_atan = (jnp.arctan(pw / jnp.maximum(ph, 1e-6))
              - jnp.arctan(tw / jnp.maximum(th, 1e-6)))
    v = (4.0 / (math.pi ** 2)) * (d_atan * d_atan)
    alpha = v / jnp.maximum(1.0 - iou + v, 1e-6)
    ciou = ciou - alpha * v

    n = jnp.sum(cell_valid)
    loc_sum = jnp.sum((1.0 - ciou) * cell_valid)

    eps = 1e-7
    pcls = jnp.clip(jax.nn.sigmoid(g[:, 5:]), eps, 1.0 - eps)
    tcls = cell_ytrue[:, 5:]
    cls_bce = -tcls * jnp.log(pcls) - (1.0 - tcls) * jnp.log(1.0 - pcls)
    cls_sum = jnp.sum(cls_bce * cell_valid[:, None])

    n_safe = jnp.maximum(n, 1.0)
    cls_den = float(max(num_classes, 1))
    loss_pos = (loc_sum / n_safe) * box_ratio + \
               (cls_sum / (n_safe * cls_den)) * cls_ratio
    loss_conf = jnp.where(conf_cnt > 0.0,
                          conf_sum / jnp.maximum(conf_cnt, 1.0), 0.0)
    loss = jnp.where(n > 0.0, loss_pos, 0.0) + loss_conf * balance_l * obj_ratio
    return loss


# ----------------------------------------------------------------------------
# Module-equivalent wrapper
# ----------------------------------------------------------------------------
class YOLOLossPallas:
    def __init__(self, anchors, num_classes, input_shape,
                 anchors_mask=[[6, 7, 8], [3, 4, 5], [0, 1, 2]], label_smoothing=0):
        self.anchors = np.array(anchors, dtype=np.float32)
        self.num_classes = num_classes
        self.bbox_attrs = 5 + num_classes
        self.input_shape = input_shape
        self.anchors_mask = anchors_mask
        self.label_smoothing = label_smoothing
        self.balance = [0.4, 1.0, 4]
        self.box_ratio = 0.05
        self.obj_ratio = 5 * (input_shape[0] * input_shape[1]) / 416 ** 2
        self.cls_ratio = 1 * (num_classes / 80)
        self.ignore_threshold = 0.5

    # numpy mirror of the PyTorch calculate_iou (xywh pairwise IoU)
    @staticmethod
    def _calculate_iou_np(box_a, box_b):
        a_x1 = box_a[:, 0] - box_a[:, 2] / 2
        a_x2 = box_a[:, 0] + box_a[:, 2] / 2
        a_y1 = box_a[:, 1] - box_a[:, 3] / 2
        a_y2 = box_a[:, 1] + box_a[:, 3] / 2
        b_x1 = box_b[:, 0] - box_b[:, 2] / 2
        b_x2 = box_b[:, 0] + box_b[:, 2] / 2
        b_y1 = box_b[:, 1] - box_b[:, 3] / 2
        b_y2 = box_b[:, 1] + box_b[:, 3] / 2
        iw = np.clip(np.minimum(a_x2[:, None], b_x2[None, :]) -
                     np.maximum(a_x1[:, None], b_x1[None, :]), 0, None)
        ih = np.clip(np.minimum(a_y2[:, None], b_y2[None, :]) -
                     np.maximum(a_y1[:, None], b_y1[None, :]), 0, None)
        inter = iw * ih
        area_a = ((a_x2 - a_x1) * (a_y2 - a_y1))[:, None]
        area_b = ((b_x2 - b_x1) * (b_y2 - b_y1))[None, :]
        return inter / (area_a + area_b - inter)

    # TODO(synk): get_target's per-GT argmax/argsort + scatter has no clean
    # Pallas equivalent (tiny, data-dependent); kept as host glue like the
    # python loop in the original module.
    def _get_target_np(self, l, targets, scaled_anchors, in_h, in_w):
        bs = len(targets)
        na = len(self.anchors_mask[l])
        noobj_mask = np.ones((bs, na, in_h, in_w), np.float32)
        box_loss_scale = np.zeros((bs, na, in_h, in_w), np.float32)
        y_true = np.zeros((bs, na, in_h, in_w, self.bbox_attrs), np.float32)

        def in_any_mask(idx):
            return any(int(idx) in m for m in self.anchors_mask)

        for b in range(bs):
            if len(targets[b]) == 0:
                continue
            bt = np.zeros_like(targets[b])
            bt[:, [0, 2]] = targets[b][:, [0, 2]] * in_w
            bt[:, [1, 3]] = targets[b][:, [1, 3]] * in_h
            bt[:, 4] = targets[b][:, 4]
            gt_box = np.concatenate([np.zeros((bt.shape[0], 2), np.float32), bt[:, 2:4]], 1)
            anchor_shapes = np.concatenate(
                [np.zeros((len(scaled_anchors), 2), np.float32),
                 np.asarray(scaled_anchors, np.float32)], 1)
            iou = self._calculate_iou_np(gt_box, anchor_shapes)
            best_ns = np.argmax(iou, axis=-1)
            sort_ns = np.argsort(-iou, axis=-1)
            for t, best_n in enumerate(best_ns):
                best_n = int(best_n)
                if not in_any_mask(best_n):
                    for index in sort_ns[t]:
                        if in_any_mask(index):
                            best_n = int(index)
                            break
                if best_n not in self.anchors_mask[l]:
                    continue
                k = self.anchors_mask[l].index(best_n)
                i = int(np.floor(bt[t, 0]))
                j = int(np.floor(bt[t, 1]))
                c = int(bt[t, 4])
                noobj_mask[b, k, j, i] = 0
                y_true[b, k, j, i, 0:4] = bt[t, 0:4]
                y_true[b, k, j, i, 4] = 1
                y_true[b, k, j, i, c + 5] = 1
                box_loss_scale[b, k, j, i] = bt[t, 2] * bt[t, 3] / in_w / in_h
        return y_true, noobj_mask, box_loss_scale

    def forward(self, l, inp, targets):
        inp = jnp.asarray(inp, jnp.float32)                 # NCHW like PyTorch
        bs, _, in_h, in_w = inp.shape
        na = len(self.anchors_mask[l])
        A = self.bbox_attrs
        Nb = na * in_h * in_w

        stride_h = self.input_shape[0] / in_h
        stride_w = self.input_shape[1] / in_w
        scaled_anchors = self.anchors / np.array([stride_w, stride_h], np.float32)

        # targets -> y_true / noobj_mask (host glue, like the python loop in torch)
        y_true, noobj_mask, box_loss_scale = self._get_target_np(
            l, targets, scaled_anchors, in_h, in_w)
        _ = 2 - box_loss_scale   # computed for fidelity; unused by this loss variant

        # ---- tiling geometry: cells -> rows of 128 lanes, tile_rows % 8 == 0
        nb_rows = -(-Nb // _LANE)
        tile_rows = min(64, -(-nb_rows // 8) * 8)           # <= 8192 cells / tile
        nb_rows_p = -(-nb_rows // tile_rows) * tile_rows
        n_tiles = nb_rows_p // tile_rows
        pad = nb_rows_p * _LANE - Nb

        # ---- batch-shared plane: grid_x, grid_y, anchor_w, anchor_h (4, rows, 128)
        saw = scaled_anchors[self.anchors_mask[l]].astype(np.float32)     # (na, 2)
        grid_x = np.broadcast_to(np.arange(in_w, dtype=np.float32), (na, in_h, in_w))
        grid_y = np.broadcast_to(np.arange(in_h, dtype=np.float32)[:, None],
                                 (na, in_h, in_w))
        anc_w = np.broadcast_to(saw[:, 0][:, None, None], (na, in_h, in_w))
        anc_h = np.broadcast_to(saw[:, 1][:, None, None], (na, in_h, in_w))
        shared = np.stack([grid_x.reshape(Nb), grid_y.reshape(Nb),
                           anc_w.reshape(Nb), anc_h.reshape(Nb)], axis=0)
        shared = np.pad(shared, ((0, 0), (0, pad))).reshape(4, nb_rows_p, _LANE)

        # ---- per-batch dense masks: obj, noobj0 (bs, 2, rows, 128)
        obj_np = (y_true[..., 4] == 1).astype(np.float32).reshape(bs, Nb)
        masks = np.stack([obj_np, noobj_mask.reshape(bs, Nb)], axis=1)
        masks = np.pad(masks, ((0, 0), (0, 0), (0, pad))).reshape(
            bs, 2, nb_rows_p, _LANE)

        # ---- GT table for the ignore test (SMEM): x1, y1, x2, y2, thr*area
        #      (thr*area = +huge for padded GTs so the compare is always false)
        max_gt = max(1, max((len(t) for t in targets), default=0))
        gt_np = np.zeros((bs, max_gt, 5), np.float32)
        gt_np[..., 4] = 1e30
        for b_i, t in enumerate(targets):
            nt = len(t)
            if nt:
                cx = t[:, 0] * in_w
                cy = t[:, 1] * in_h
                w = t[:, 2] * in_w
                h = t[:, 3] * in_h
                gt_np[b_i, :nt, 0] = cx - w * 0.5
                gt_np[b_i, :nt, 1] = cy - h * 0.5
                gt_np[b_i, :nt, 2] = cx + w * 0.5
                gt_np[b_i, :nt, 3] = cy + h * 0.5
                gt_np[b_i, :nt, 4] = self.ignore_threshold * (w * h)
        gt_tab = gt_np.reshape(bs, max_gt * 5)

        # ---- gathered obj cells for the sparse loc-CIoU / class-BCE path ------
        obj_cells = np.argwhere(y_true[..., 4] == 1)        # (n_obj, 4): b,k,j,i
        n_obj = obj_cells.shape[0]
        n_pad = max(1, n_obj)
        cell_b = np.zeros((n_pad,), np.int32)
        cell_k = np.zeros((n_pad,), np.int32)
        cell_j = np.zeros((n_pad,), np.int32)
        cell_i = np.zeros((n_pad,), np.int32)
        cell_valid = np.zeros((n_pad,), np.float32)
        cell_anchor = np.zeros((n_pad, 2), np.float32)
        cell_ytrue = np.zeros((n_pad, A), np.float32)
        if n_obj:
            cell_b[:n_obj] = obj_cells[:, 0]
            cell_k[:n_obj] = obj_cells[:, 1]
            cell_j[:n_obj] = obj_cells[:, 2]
            cell_i[:n_obj] = obj_cells[:, 3]
            cell_valid[:n_obj] = 1.0
            cell_anchor[:n_obj] = saw[obj_cells[:, 1]]
            cell_ytrue[:n_obj] = y_true[obj_cells[:, 0], obj_cells[:, 1],
                                        obj_cells[:, 2], obj_cells[:, 3]]

        return _yolo_loss_device(
            inp, jnp.asarray(shared), jnp.asarray(masks), jnp.asarray(gt_tab),
            jnp.asarray(cell_b), jnp.asarray(cell_k), jnp.asarray(cell_j),
            jnp.asarray(cell_i), jnp.asarray(cell_anchor),
            jnp.asarray(cell_ytrue), jnp.asarray(cell_valid),
            na=na, A=A, in_h=in_h, in_w=in_w, tile_rows=tile_rows,
            n_tiles=n_tiles, max_gt=max_gt, num_classes=self.num_classes,
            box_ratio=float(self.box_ratio), obj_ratio=float(self.obj_ratio),
            cls_ratio=float(self.cls_ratio), balance_l=float(self.balance[l]),
            ignore_threshold=float(self.ignore_threshold))


if __name__ == "__main__":
    # deterministic synthetic setup (no checkpoint / file loading)
    anchors = [(12, 16), (19, 36), (40, 28), (36, 75), (76, 55),
               (72, 146), (142, 110), (192, 243), (459, 401)]
    num_classes = 3
    input_shape = (256, 256)
    crit = YOLOLossPallas(anchors, num_classes, input_shape)

    bs, in_h, in_w = 2, 16, 16
    l = 1                                   # anchors_mask[1] = [3, 4, 5]
    na = len(crit.anchors_mask[l])
    A = crit.bbox_attrs

    key = jax.random.PRNGKey(0)
    x = 0.5 * jax.random.normal(key, (bs, na * A, in_h, in_w), dtype=jnp.float32)

    targets = [
        np.array([[0.50, 0.50, 0.30, 0.22, 0],
                  [0.20, 0.30, 0.14, 0.30, 2]], dtype=np.float32),
        np.array([[0.70, 0.60, 0.28, 0.58, 1]], dtype=np.float32),
    ]

    loss = crit.forward(l, x, targets)
    jax.block_until_ready(loss)
    print("KERNEL_OK")
</pallas_src>

<mosaic_0001>
module attributes {stable_mosaic.version = 11 : i64} {
  func.func @kernel(%arg0: i32, %arg1: i32, %arg2: memref<1x5x8x128xf32, #tpu.memory_space<vmem>>, %arg3: memref<4x8x128xf32, #tpu.memory_space<vmem>>, %arg4: memref<1x2x8x128xf32, #tpu.memory_space<vmem>>, %arg5: memref<2x10xf32, #tpu.memory_space<smem>>, %arg6: memref<1x8x128xf32, #tpu.memory_space<vmem>>) attributes {dimension_semantics = [#tpu.dimension_semantics<parallel>, #tpu.dimension_semantics<arbitrary>], iteration_bounds = array<i64: 2, 1>, scalar_prefetch = 0 : i64, scratch_operands = 0 : i64, tpu.core_type = #tpu.core_type<tc>, window_params = [{transform_indices = @transform_0, window_bounds = array<i64: 1, 5, 8, 128>}, {transform_indices = @transform_1, window_bounds = array<i64: 4, 8, 128>}, {transform_indices = @transform_2, window_bounds = array<i64: 1, 2, 8, 128>}, {transform_indices = @transform_3, window_bounds = array<i64: 2, 10>}, {transform_indices = @transform_4, window_bounds = array<i64: 1, 8, 128>}]} {
    %c0_i32 = arith.constant 0 : i32
    %0 = arith.cmpi eq, %arg1, %c0_i32 : i32
    %1 = arith.extui %0 : i1 to i32
    %c0_i32_0 = arith.constant 0 : i32
    %2 = arith.cmpi ne, %1, %c0_i32_0 : i32
    scf.if %2 {
      %cst_80 = arith.constant 0.000000e+00 : f32
      %183 = vector.broadcast %cst_80 : f32 to vector<8x128xf32>
      %c0_81 = arith.constant 0 : index
      %c0_82 = arith.constant 0 : index
      %c0_83 = arith.constant 0 : index
      %184 = vector.load %arg6[%c0_81, %c0_82, %c0_83] : memref<1x8x128xf32, #tpu.memory_space<vmem>>, vector<1x8x128xf32>
      %185 = vector.shape_cast %184 : vector<1x8x128xf32> to vector<8x128xf32>
      %186 = vector.shape_cast %183 : vector<8x128xf32> to vector<1x8x128xf32>
      tpu.vector_store %arg6[%c0_81, %c0_82, %c0_83], %186 {strides = array<i32>} : memref<1x8x128xf32, #tpu.memory_space<vmem>>, vector<1x8x128xf32>,
    } else {
    }
    %c0 = arith.constant 0 : index
    %c0_1 = arith.constant 0 : index
    %c0_2 = arith.constant 0 : index
    %c0_3 = arith.constant 0 : index
    %3 = vector.load %arg2[%c0, %c0_1, %c0_2, %c0_3] : memref<1x5x8x128xf32, #tpu.memory_space<vmem>>, vector<1x1x8x128xf32>
    %4 = vector.shape_cast %3 : vector<1x1x8x128xf32> to vector<8x128xf32>
    %5 = arith.negf %4 : vector<8x128xf32>
    %6 = math.exp %5 : vector<8x128xf32>
    %cst = arith.constant 1.000000e+00 : f32
    %7 = vector.broadcast %cst : f32 to vector<8x128xf32>
    %8 = arith.addf %7, %6 : vector<8x128xf32>
    %9 = arith.divf %7, %8 : vector<8x128xf32>
    %c0_4 = arith.constant 0 : index
    %c0_5 = arith.constant 0 : index
    %c0_6 = arith.constant 0 : index
    %10 = vector.load %arg3[%c0_4, %c0_5, %c0_6] : memref<4x8x128xf32, #tpu.memory_space<vmem>>, vector<1x8x128xf32>
    %11 = vector.shape_cast %10 : vector<1x8x128xf32> to vector<8x128xf32>
    %12 = arith.addf %9, %11 : vector<8x128xf32>
    %c0_7 = arith.constant 0 : index
    %c1 = arith.constant 1 : index
    %c0_8 = arith.constant 0 : index
    %c0_9 = arith.constant 0 : index
    %13 = vector.load %arg2[%c0_7, %c1, %c0_8, %c0_9] : memref<1x5x8x128xf32, #tpu.memory_space<vmem>>, vector<1x1x8x128xf32>
    %14 = vector.shape_cast %13 : vector<1x1x8x128xf32> to vector<8x128xf32>
    %15 = arith.negf %14 : vector<8x128xf32>
    %16 = math.exp %15 : vector<8x128xf32>
    %cst_10 = arith.constant 1.000000e+00 : f32
    %17 = vector.broadcast %cst_10 : f32 to vector<8x128xf32>
    %18 = arith.addf %17, %16 : vector<8x128xf32>
    %19 = arith.divf %17, %18 : vector<8x128xf32>
    %c1_11 = arith.constant 1 : index
    %c0_12 = arith.constant 0 : index
    %c0_13 = arith.constant 0 : index
    %20 = vector.load %arg3[%c1_11, %c0_12, %c0_13] : memref<4x8x128xf32, #tpu.memory_space<vmem>>, vector<1x8x128xf32>
    %21 = vector.shape_cast %20 : vector<1x8x128xf32> to vector<8x128xf32>
    %22 = arith.addf %19, %21 : vector<8x128xf32>
    %c0_14 = arith.constant 0 : index
    %c2 = arith.constant 2 : index
    %c0_15 = arith.constant 0 : index
    %c0_16 = arith.constant 0 : index
    %23 = vector.load %arg2[%c0_14, %c2, %c0_15, %c0_16] : memref<1x5x8x128xf32, #tpu.memory_space<vmem>>, vector<1x1x8x128xf32>
    %24 = vector.shape_cast %23 : vector<1x1x8x128xf32> to vector<8x128xf32>
    %25 = math.exp %24 : vector<8x128xf32>
    %c2_17 = arith.constant 2 : index
    %c0_18 = arith.constant 0 : index
    %c0_19 = arith.constant 0 : index
    %26 = vector.load %arg3[%c2_17, %c0_18, %c0_19] : memref<4x8x128xf32, #tpu.memory_space<vmem>>, vector<1x8x128xf32>
    %27 = vector.shape_cast %26 : vector<1x8x128xf32> to vector<8x128xf32>
    %28 = arith.mulf %25, %27 : vector<8x128xf32>
    %c0_20 = arith.constant 0 : index
    %c3 = arith.constant 3 : index
    %c0_21 = arith.constant 0 : index
    %c0_22 = arith.constant 0 : index
    %29 = vector.load %arg2[%c0_20, %c3, %c0_21, %c0_22] : memref<1x5x8x128xf32, #tpu.memory_space<vmem>>, vector<1x1x8x128xf32>
    %30 = vector.shape_cast %29 : vector<1x1x8x128xf32> to vector<8x128xf32>
    %31 = math.exp %30 : vector<8x128xf32>
    %c3_23 = arith.constant 3 : index
    %c0_24 = arith.constant 0 : index
    %c0_25 = arith.constant 0 : index
    %32 = vector.load %arg3[%c3_23, %c0_24, %c0_25] : memref<4x8x128xf32, #tpu.memory_space<vmem>>, vector<1x8x128xf32>
    %33 = vector.shape_cast %32 : vector<1x8x128xf32> to vector<8x128xf32>
    %34 = arith.mulf %31, %33 : vector<8x128xf32>
    %cst_26 = arith.constant 5.000000e-01 : f32
    %35 = vector.broadcast %cst_26 : f32 to vector<8x128xf32>
    %36 = arith.mulf %28, %35 : vector<8x128xf32>
    %37 = arith.subf %12, %36 : vector<8x128xf32>
    %cst_27 = arith.constant 5.000000e-01 : f32
    %38 = vector.broadcast %cst_27 : f32 to vector<8x128xf32>
    %39 = arith.mulf %28, %38 : vector<8x128xf32>
    %40 = arith.addf %12, %39 : vector<8x128xf32>
    %cst_28 = arith.constant 5.000000e-01 : f32
    %41 = vector.broadcast %cst_28 : f32 to vector<8x128xf32>
    %42 = arith.mulf %34, %41 : vector<8x128xf32>
    %43 = arith.subf %22, %42 : vector<8x128xf32>
    %cst_29 = arith.constant 5.000000e-01 : f32
    %44 = vector.broadcast %cst_29 : f32 to vector<8x128xf32>
    %45 = arith.mulf %34, %44 : vector<8x128xf32>
    %46 = arith.addf %22, %45 : vector<8x128xf32>
    %47 = arith.mulf %28, %34 : vector<8x128xf32>
    %cst_30 = arith.constant 5.000000e-01 : f32
    %48 = vector.broadcast %cst_30 : f32 to vector<8x128xf32>
    %49 = arith.mulf %47, %48 : vector<8x128xf32>
    %cst_31 = arith.constant 0.000000e+00 : f32
    %50 = vector.broadcast %cst_31 : f32 to vector<8x128xf32>
    %c0_i32_32 = arith.constant 0 : i32
    %c5_i32 = arith.constant 5 : i32
    %51 = arith.muli %c0_i32_32, %c5_i32 : i32
    %c0_i32_33 = arith.constant 0 : i32
    %52 = arith.addi %51, %c0_i32_33 : i32
    %53 = arith.index_cast %arg0 : i32 to index
    %54 = arith.index_cast %52 : i32 to index
    %55 = memref.load %arg5[%53, %54] : memref<2x10xf32, #tpu.memory_space<smem>>
    %c1_i32 = arith.constant 1 : i32
    %56 = arith.addi %51, %c1_i32 : i32
    %57 = arith.index_cast %arg0 : i32 to index
    %58 = arith.index_cast %56 : i32 to index
    %59 = memref.load %arg5[%57, %58] : memref<2x10xf32, #tpu.memory_space<smem>>
    %c2_i32 = arith.constant 2 : i32
    %60 = arith.addi %51, %c2_i32 : i32
    %61 = arith.index_cast %arg0 : i32 to index
    %62 = arith.index_cast %60 : i32 to index
    %63 = memref.load %arg5[%61, %62] : memref<2x10xf32, #tpu.memory_space<smem>>
    %c3_i32 = arith.constant 3 : i32
    %64 = arith.addi %51, %c3_i32 : i32
    %65 = arith.index_cast %arg0 : i32 to index
    %66 = arith.index_cast %64 : i32 to index
    %67 = memref.load %arg5[%65, %66] : memref<2x10xf32, #tpu.memory_space<smem>>
    %c4_i32 = arith.constant 4 : i32
    %68 = arith.addi %51, %c4_i32 : i32
    %69 = arith.index_cast %arg0 : i32 to index
    %70 = arith.index_cast %68 : i32 to index
    %71 = memref.load %arg5[%69, %70] : memref<2x10xf32, #tpu.memory_space<smem>>
    %72 = vector.broadcast %63 : f32 to vector<8x128xf32>
    %73 = arith.minimumf %72, %40 : vector<8x128xf32>
    %74 = vector.broadcast %55 : f32 to vector<8x128xf32>
    %75 = arith.maximumf %74, %37 : vector<8x128xf32>
    %76 = arith.subf %73, %75 : vector<8x128xf32>
    %cst_34 = arith.constant 0.000000e+00 : f32
    %77 = vector.broadcast %cst_34 : f32 to vector<8x128xf32>
    %78 = arith.maximumf %76, %77 : vector<8x128xf32>
    %79 = vector.broadcast %67 : f32 to vector<8x128xf32>
    %80 = arith.minimumf %79, %46 : vector<8x128xf32>
    %81 = vector.broadcast %59 : f32 to vector<8x128xf32>
    %82 = arith.maximumf %81, %43 : vector<8x128xf32>
    %83 = arith.subf %80, %82 : vector<8x128xf32>
    %cst_35 = arith.constant 0.000000e+00 : f32
    %84 = vector.broadcast %cst_35 : f32 to vector<8x128xf32>
    %85 = arith.maximumf %83, %84 : vector<8x128xf32>
    %86 = arith.mulf %78, %85 : vector<8x128xf32>
    %cst_36 = arith.constant 1.500000e+00 : f32
    %87 = vector.broadcast %cst_36 : f32 to vector<8x128xf32>
    %88 = arith.mulf %86, %87 : vector<8x128xf32>
    %89 = vector.broadcast %71 : f32 to vector<8x128xf32>
    %90 = arith.addf %89, %49 : vector<8x128xf32>
    %91 = arith.cmpf ogt, %88, %90 : vector<8x128xf32>
    %92 = arith.extui %91 : vector<8x128xi1> to vector<8x128xi32>
    %93 = arith.sitofp %92 : vector<8x128xi32> to vector<8x128xf32>
    %94 = arith.maximumf %50, %93 : vector<8x128xf32>
    %c1_i32_37 = arith.constant 1 : i32
    %c5_i32_38 = arith.constant 5 : i32
    %95 = arith.muli %c1_i32_37, %c5_i32_38 : i32
    %c0_i32_39 = arith.constant 0 : i32
    %96 = arith.addi %95, %c0_i32_39 : i32
    %97 = arith.index_cast %arg0 : i32 to index
    %98 = arith.index_cast %96 : i32 to index
    %99 = memref.load %arg5[%97, %98] : memref<2x10xf32, #tpu.memory_space<smem>>
    %c1_i32_40 = arith.constant 1 : i32
    %100 = arith.addi %95, %c1_i32_40 : i32
    %101 = arith.index_cast %arg0 : i32 to index
    %102 = arith.index_cast %100 : i32 to index
    %103 = memref.load %arg5[%101, %102] : memref<2x10xf32, #tpu.memory_space<smem>>
    %c2_i32_41 = arith.constant 2 : i32
    %104 = arith.addi %95, %c2_i32_41 : i32
    %105 = arith.index_cast %arg0 : i32 to index
    %106 = arith.index_cast %104 : i32 to index
    %107 = memref.load %arg5[%105, %106] : memref<2x10xf32, #tpu.memory_space<smem>>
    %c3_i32_42 = arith.constant 3 : i32
    %108 = arith.addi %95, %c3_i32_42 : i32
    %109 = arith.index_cast %arg0 : i32 to index
    %110 = arith.index_cast %108 : i32 to index
    %111 = memref.load %arg5[%109, %110] : memref<2x10xf32, #tpu.memory_space<smem>>
    %c4_i32_43 = arith.constant 4 : i32
    %112 = arith.addi %95, %c4_i32_43 : i32
    %113 = arith.index_cast %arg0 : i32 to index
    %114 = arith.index_cast %112 : i32 to index
    %115 = memref.load %arg5[%113, %114] : memref<2x10xf32, #tpu.memory_space<smem>>
    %116 = vector.broadcast %107 : f32 to vector<8x128xf32>
    %117 = arith.minimumf %116, %40 : vector<8x128xf32>
    %118 = vector.broadcast %99 : f32 to vector<8x128xf32>
    %119 = arith.maximumf %118, %37 : vector<8x128xf32>
    %120 = arith.subf %117, %119 : vector<8x128xf32>
    %cst_44 = arith.constant 0.000000e+00 : f32
    %121 = vector.broadcast %cst_44 : f32 to vector<8x128xf32>
    %122 = arith.maximumf %120, %121 : vector<8x128xf32>
    %123 = vector.broadcast %111 : f32 to vector<8x128xf32>
    %124 = arith.minimumf %123, %46 : vector<8x128xf32>
    %125 = vector.broadcast %103 : f32 to vector<8x128xf32>
    %126 = arith.maximumf %125, %43 : vector<8x128xf32>
    %127 = arith.subf %124, %126 : vector<8x128xf32>
    %cst_45 = arith.constant 0.000000e+00 : f32
    %128 = vector.broadcast %cst_45 : f32 to vector<8x128xf32>
    %129 = arith.maximumf %127, %128 : vector<8x128xf32>
    %130 = arith.mulf %122, %129 : vector<8x128xf32>
    %cst_46 = arith.constant 1.500000e+00 : f32
    %131 = vector.broadcast %cst_46 : f32 to vector<8x128xf32>
    %132 = arith.mulf %130, %131 : vector<8x128xf32>
    %133 = vector.broadcast %115 : f32 to vector<8x128xf32>
    %134 = arith.addf %133, %49 : vector<8x128xf32>
    %135 = arith.cmpf ogt, %132, %134 : vector<8x128xf32>
    %136 = arith.extui %135 : vector<8x128xi1> to vector<8x128xi32>
    %137 = arith.sitofp %136 : vector<8x128xi32> to vector<8x128xf32>
    %138 = arith.maximumf %94, %137 : vector<8x128xf32>
    %c2_i32_47 = arith.constant 2 : i32
    %c0_48 = arith.constant 0 : index
    %c0_49 = arith.constant 0 : index
    %c0_50 = arith.constant 0 : index
    %c0_51 = arith.constant 0 : index
    %139 = vector.load %arg4[%c0_48, %c0_49, %c0_50, %c0_51] : memref<1x2x8x128xf32, #tpu.memory_space<vmem>>, vector<1x1x8x128xf32>
    %140 = vector.shape_cast %139 : vector<1x1x8x128xf32> to vector<8x128xf32>
    %cst_52 = arith.constant 5.000000e-01 : f32
    %141 = vector.broadcast %cst_52 : f32 to vector<8x128xf32>
    %142 = arith.cmpf ogt, %138, %141 : vector<8x128xf32>
    %c0_53 = arith.constant 0 : index
    %c1_54 = arith.constant 1 : index
    %c0_55 = arith.constant 0 : index
    %c0_56 = arith.constant 0 : index
    %143 = vector.load %arg4[%c0_53, %c1_54, %c0_55, %c0_56] : memref<1x2x8x128xf32, #tpu.memory_space<vmem>>, vector<1x1x8x128xf32>
    %144 = vector.shape_cast %143 : vector<1x1x8x128xf32> to vector<8x128xf32>
    %cst_57 = arith.constant 0.000000e+00 : f32
    %145 = vector.broadcast %cst_57 : f32 to vector<8x128xf32>
    %146 = arith.select %142, %145, %144 : vector<8x128xi1>, vector<8x128xf32>
    %147 = arith.maximumf %146, %140 : vector<8x128xf32>
    %c0_58 = arith.constant 0 : index
    %c4 = arith.constant 4 : index
    %c0_59 = arith.constant 0 : index
    %c0_60 = arith.constant 0 : index
    %148 = vector.load %arg2[%c0_58, %c4, %c0_59, %c0_60] : memref<1x5x8x128xf32, #tpu.memory_space<vmem>>, vector<1x1x8x128xf32>
    %149 = vector.shape_cast %148 : vector<1x1x8x128xf32> to vector<8x128xf32>
    %cst_61 = arith.constant -16.1180954 : f32
    %cst_62 = arith.constant 16.1180954 : f32
    %150 = vector.broadcast %cst_61 : f32 to vector<8x128xf32>
    %151 = arith.maximumf %150, %149 : vector<8x128xf32>
    %152 = vector.broadcast %cst_62 : f32 to vector<8x128xf32>
    %153 = arith.minimumf %152, %151 : vector<8x128xf32>
    %cst_63 = arith.constant 0.000000e+00 : f32
    %154 = vector.broadcast %cst_63 : f32 to vector<8x128xf32>
    %155 = arith.maximumf %153, %154 : vector<8x128xf32>
    %156 = arith.mulf %140, %153 : vector<8x128xf32>
    %157 = arith.subf %155, %156 : vector<8x128xf32>
    %158 = math.absf %153 : vector<8x128xf32>
    %cst_64 = arith.constant 0.000000e+00 : f32
    %159 = vector.broadcast %cst_64 : f32 to vector<8x128xf32>
    %160 = arith.subf %159, %158 : vector<8x128xf32>
    %161 = math.exp %160 : vector<8x128xf32>
    %cst_65 = arith.constant 1.000000e+00 : f32
    %162 = vector.broadcast %cst_65 : f32 to vector<8x128xf32>
    %163 = arith.addf %162, %161 : vector<8x128xf32>
    %164 = math.log %163 : vector<8x128xf32>
    %165 = arith.addf %157, %164 : vector<8x128xf32>
    %166 = arith.mulf %165, %147 : vector<8x128xf32>
    %c0_66 = arith.constant 0 : index
    %c0_67 = arith.constant 0 : index
    %c0_68 = arith.constant 0 : index
    %167 = vector.load %arg6[%c0_66, %c0_67, %c0_68] : memref<1x8x128xf32, #tpu.memory_space<vmem>>, vector<1x1x128xf32>
    %168 = vector.shape_cast %167 : vector<1x1x128xf32> to vector<1x128xf32>
    %cst_69 = arith.constant dense<0.000000e+00> : vector<128xf32>
    %169 = vector.multi_reduction <add>, %166, %cst_69 [0] : vector<8x128xf32> to vector<128xf32>
    %170 = vector.shape_cast %169 : vector<128xf32> to vector<1x128xf32>
    %171 = arith.addf %168, %170 : vector<1x128xf32>
    %c0_70 = arith.constant 0 : index
    %c0_71 = arith.constant 0 : index
    %c0_72 = arith.constant 0 : index
    %172 = vector.load %arg6[%c0_70, %c0_71, %c0_72] : memref<1x8x128xf32, #tpu.memory_space<vmem>>, vector<1x1x128xf32>
    %173 = vector.shape_cast %172 : vector<1x1x128xf32> to vector<1x128xf32>
    %174 = vector.shape_cast %171 : vector<1x128xf32> to vector<1x1x128xf32>
    tpu.vector_store %arg6[%c0_70, %c0_71, %c0_72], %174 {strides = array<i32>} : memref<1x8x128xf32, #tpu.memory_space<vmem>>, vector<1x1x128xf32>,
    %c0_73 = arith.constant 0 : index
    %c1_74 = arith.constant 1 : index
    %c0_75 = arith.constant 0 : index
    %175 = vector.load %arg6[%c0_73, %c1_74, %c0_75] : memref<1x8x128xf32, #tpu.memory_space<vmem>>, vector<1x1x128xf32>
    %176 = vector.shape_cast %175 : vector<1x1x128xf32> to vector<1x128xf32>
    %cst_76 = arith.constant dense<0.000000e+00> : vector<128xf32>
    %177 = vector.multi_reduction <add>, %147, %cst_76 [0] : vector<8x128xf32> to vector<128xf32>
    %178 = vector.shape_cast %177 : vector<128xf32> to vector<1x128xf32>
    %179 = arith.addf %176, %178 : vector<1x128xf32>
    %c0_77 = arith.constant 0 : index
    %c1_78 = arith.constant 1 : index
    %c0_79 = arith.constant 0 : index
    %180 = vector.load %arg6[%c0_77, %c1_78, %c0_79] : memref<1x8x128xf32, #tpu.memory_space<vmem>>, vector<1x1x128xf32>
    %181 = vector.shape_cast %180 : vector<1x1x128xf32> to vector<1x128xf32>
    %182 = vector.shape_cast %179 : vector<1x128xf32> to vector<1x1x128xf32>
    tpu.vector_store %arg6[%c0_77, %c1_78, %c0_79], %182 {strides = array<i32>} : memref<1x8x128xf32, #tpu.memory_space<vmem>>, vector<1x1x128xf32>,
    return
  }
  func.func @transform_0(%arg0: i32, %arg1: i32) -> (i32, i32, i32, i32) {
    %c0_i32 = arith.constant 0 : i32
    %c0_i32_0 = arith.constant 0 : i32
    %c0_i32_1 = arith.constant 0 : i32
    return %arg0, %c0_i32, %arg1, %c0_i32_0 : i32, i32, i32, i32
  }
  func.func @transform_1(%arg0: i32, %arg1: i32) -> (i32, i32, i32) {
    %c0_i32 = arith.constant 0 : i32
    %c0_i32_0 = arith.constant 0 : i32
    %c0_i32_1 = arith.constant 0 : i32
    return %c0_i32, %arg1, %c0_i32_0 : i32, i32, i32
  }
  func.func @transform_2(%arg0: i32, %arg1: i32) -> (i32, i32, i32, i32) {
    %c0_i32 = arith.constant 0 : i32
    %c0_i32_0 = arith.constant 0 : i32
    %c0_i32_1 = arith.constant 0 : i32
    return %arg0, %c0_i32, %arg1, %c0_i32_0 : i32, i32, i32, i32
  }
  func.func @transform_3(%arg0: i32, %arg1: i32) -> (i32, i32) {
    %c0_i32 = arith.constant 0 : i32
    %c0_i32_0 = arith.constant 0 : i32
    %c0_i32_1 = arith.constant 0 : i32
    return %c0_i32, %c0_i32_0 : i32, i32
  }
  func.func @transform_4(%arg0: i32, %arg1: i32) -> (i32, i32, i32) {
    %c0_i32 = arith.constant 0 : i32
    %c0_i32_0 = arith.constant 0 : i32
    %c0_i32_1 = arith.constant 0 : i32
    return %arg0, %c0_i32, %c0_i32_0 : i32, i32, i32
  }
}

</mosaic_0001>

<bundles_post_ra>
// kernel: _yolo_loss_device.1
= control target key start
LH: loop header
LB: loop body
LE: loop exit
PB: predicated region body
PF: predicated region fallthrough
CT: control target
= control target key end

     0   :  { %9 = vsyncpa [#allocation3], 0  ;;  %s693_s15 = smov 0   ;;  %s695_s16 = smov 0   ;;  %s830_s0 = inlined_call_operand.vmem [shape: f32[2,5,8,128], index: 0, kind: input, shape index: {}]   ;;  %s831_s1 = inlined_call_operand.vmem [shape: f32[4,8,128], index: 1, kind: input, shape index: {}]   ;;  %s832_s2 = inlined_call_operand.vmem [shape: f32[2,2,8,128], index: 2, kind: input, shape index: {}]   ;;  %s833_s3 = inlined_call_operand.vmem [shape: f32[2,10], index: 3, kind: input, shape index: {}]   ;;  %s834_s4 = inlined_call_operand.vmem [shape: f32[2,8,128], index: 4, kind: output, shape index: {}]  }
   0x1   :  { %s697_s17 = smov 0  }
   0x2 LB: > { %s541_s18 = sadd.s32 4294967295, %s664_s17   ;;  %s27_s19 = sadd.s32 1, %s660_s16  ;;  %s664_s17 = sphi %s697_s17, %s15_s17   ;;  %s660_s16 = sphi %s695_s16, %s838_s16   ;;  %s656_s15 = sphi %s693_s15, %s837_s15  }
   0x3   : > { %p29_p0 = scmp.ge.s32.totalorder %s27_s19, 2  ;;  %p543_p1 = scmp.ge.s32.totalorder %s664_s17, 1 }
   0x4   : > { %p161_p2 = scmp.lt.s32.totalorder %s664_s17, 3  ;;  %p718_p4 = scmp.eq.s32.totalorder %s541_s18, 0 }
   0x5   : > { %s840_s19 = smov (%p29_p0, %s27_s19), 0  ;;  %s181_s24 = sshll.u32 %s833_s3, 4  ;;  %s182_s24 = int_to_ptr.vmem [resolvable:$true] %s181_s24 }
   0x6   : > { %p714_p3 = pnand %p543_p1, %p161_p2  ;;  %s623_s25 = scalar_lea.vmem %s182_s24, 32 }
   0x7   : > { %p624_p7 = scmp.ne.s32.totalorder %s182_s24, %s623_s25  ;;  %p631_p11 = scmp.lt.s32.totalorder %s182_s24, %s182_s24 }
   0x8   : > { %p575_p5 = pneg %p714_p3  ;;  %p632_p12 = scmp.lt.s32.totalorder %s623_s25, %s623_s25 }
   0xa   : > { %p576_p6 = pnand %p718_p4, %p575_p5  ;;  %p633_p13 = por %p632_p12, %p631_p11 }
   0xc   : > { %p625_p8 = pneg %p576_p6 }
   0xe   : > { %p626_p9 = pnand %p625_p8, %p624_p7 }
  0x10   : > { %p627_p10 = pneg %p626_p9 }
  0x12   : > { %p634_p0 = pnand %p633_p13, %p627_p10 }
  0x14   : > { %637 = shalt.err (!%p634_p0)
}
  0x15   : > { %s666_s26 = smov [#allocation2]   ;;  %216 = sbr.rel (%p714_p3) target bundleno = 111 (0x6f), region = 36 }
  0x16   : > { %578 = dma.vmem_to_smem (!%p576_p6), %s182_s24, 32, %s666_s26, [#allocation3]  }
  0x1a   : > { %651 = dma.done.wait (%p718_p4), [#allocation3], 32  }
  0x1b   : > { %653 = vsyncadd (%p718_p4), [#allocation3], 4294967264 }
  0x1c   : > { %222 = sfence }
  0x1d   : > { %p257_p1 = scmp.lt.s32.totalorder %s656_s15, 1  ;;  %v667_v0 = vmov 0.0   ;;  %s755_s10 = sshll.u32 %s656_s15, 7  ;;  %v558_v19 = vld [vmem:[%s831_s1 + $0x10] sm:$0xff]  ;;  %v560_v21 = vld [vmem:[%s831_s1 + $0x18] sm:$0xff]  ;;  %v293_v25 = vld [vmem:[%s831_s1] sm:$0xff] }
  0x1e   : > { %s330_s11 = sadd.s32 1, %s755_s10  ;;  %s332_s12 = sadd.s32 2, %s755_s10  ;;  %v556_v27 = vld [vmem:[%s831_s1 + $0x8] sm:$0xff] }
  0x1f   : > { %s737_s27 = scalar_select %p257_p1, %s656_s15, 1 }
  0x20   : > { %s760_s13 = sld [smem:[#allocation2 + %s755_s10]]  ;;  %s334_s14 = sadd.s32 3, %s755_s10 }
  0x21   : > { %s570_s28 = smul.u32 40, %s737_s27  ;;  %s552_s29 = sshll.u32 %s737_s27, 3 }
  0x22   : > { %s747_s9 = scalar_lea.vmem %s834_s4, %s552_s29  ;;  %s763_s15 = sld [smem:[#allocation2 + %s330_s11]] }
  0x23   : > { %s264_s6 = scalar_lea.vmem %s830_s0, %s570_s28  ;;  %285 = vst [vmem:[%s747_s9] sm:$0xff] %v667_v0  ;;  %s358_s18 = sadd.s32 5, %s755_s10 }
  0x24   : > { %v286_v1 = vld [vmem:[%s264_s6] sm:$0xff]  ;;  %v554_v2 = vld [vmem:[%s264_s6 + $0x8] sm:$0xff]  ;;  %v557_v7 = vld [vmem:[%s264_s6 + $0x10] sm:$0xff]  ;;  %s766_s20 = sld [smem:[#allocation2 + %s332_s12]]  ;;  %s360_s21 = sadd.s32 6, %s755_s10 }
  0x25   : > { %v553_v3 = vmul.f32 -1.442695, %v286_v1  ;;  %v555_v4 = vmul.f32 -1.442695, %v554_v2  ;;  %v565_v5 = vld [vmem:[%s264_s6 + $0x20] sm:$0xff]  ;;  %v559_v8 = vld [vmem:[%s264_s6 + $0x18] sm:$0xff] }
  0x26   : > { %v751_v6 = vclamps-f32 %v565_v5, 16.118095  ;;  %v308_v10 = vmul.f32 1.442695, %v557_v7  ;;  %v315_v12 = vmul.f32 1.442695, %v559_v8  ;;  %v340_v31 = vstv %s760_s13 }
  0x27   : > { %607 = vpow2.f32 %v553_v3  ;;  %s769_s22 = sld [smem:[#allocation2 + %s334_s14]]  ;;  %s362_s23 = sadd.s32 7, %s755_s10 }
  0x28   : > { %609 = vpow2.f32 %v555_v4  ;;  %v401_v9 = vand.u32 2147483647, %v751_v6  ;;  %s775_s26 = sld [smem:[#allocation2 + %s358_s18]]  ;;  %s364_s28 = sadd.s32 8, %s755_s10  ;;  %v346_v36 = vstv %s763_s15 }
  0x29   : > { %611 = vpow2.f32 %v308_v10  ;;  %s781_s5 = sld [smem:[#allocation2 + %s360_s21]]  ;;  %s336_s8 = sadd.s32 4, %s755_s10 }
  0x2a   : > { %v402_v11 = vsub.f32 0.0, %v401_v9  ;;  %613 = vpow2.f32 %v315_v12  ;;  %s783_s6 = sld [smem:[#allocation2 + %s362_s23]]  ;;  %s366_s14 = sadd.s32 9, %s755_s10  ;;  %v338_v34 = vstv %s766_s20 }
  0x2b   : > { %s785_s7 = sld [smem:[#allocation2 + %s364_s28]]  ;;  %s569_s13 = sshll.u32 %s737_s27, 4 }
  0x2c   : > { %v403_v13 = vmul.f32 1.442695, %v402_v11  ;;  %s795_s23 = sld [smem:[#allocation2 + %s336_s8]]  ;;  %v398_v11 = vmax.f32 %v751_v6, 0.0 }
  0x2d   : > { %v344_v35 = vstv %s769_s22  ;;  %s801_s10 = sld [smem:[#allocation2 + %s366_s14]]  ;;  %s276_s22 = scalar_lea.vmem %s832_s2, %s569_s13 }
  0x2e   : > { %615 = vpow2.f32 %v403_v13  ;;  %v370_v39 = vstv %s775_s26  ;;  %v388_v3 = vld [vmem:[%s276_s22] sm:$0xff] }
  0x2f   : > { %v376_v43 = vstv %s781_s5  ;;  %v399_v12 = vmul.f32 %v751_v6, %v388_v3 }
  0x30   : > { %v368_v38 = vstv %s783_s6 }
  0x31   : > { %v374_v42 = vstv %s785_s7 }
  0x32   : > { %v352_v61 = vstv %s795_s23 }
  0x33   : > { %v382_v63 = vstv %s801_s10 }
  0x34   : > { %v608_v14 = vpop.eup %607 }
  0x35   : > { %v610_v15 = vpop.eup %609  ;;  %v290_v16 = vadd.f32 1.0, %v608_v14 }
  0x36   : > { %v300_v17 = vadd.f32 1.0, %v610_v15  ;;  %v612_v18 = vpop.eup %611 }
  0x37   : > { %617 = vrcp.f32 %v290_v16  ;;  %v614_v20 = vpop.eup %613  ;;  %v312_v23 = vmul.f32 %v612_v18, %v558_v19 }
  0x38   : > { %619 = vrcp.f32 %v300_v17  ;;  %v319_v24 = vmul.f32 %v614_v20, %v560_v21  ;;  %v400_v17 = vsub.f32 %v398_v11, %v399_v12  ;;  %v564_v20 = vld [vmem:[%s276_s22 + $0x8] sm:$0xff] }
  0x39   : > { %v320_v28 = vmul.f32 0.5, %v312_v23 }
  0x3a   : > { %v323_v30 = vmul.f32 0.5, %v319_v24  ;;  %v326_v46 = vmul.f32 %v319_v24, %v312_v23 }
  0x3b   : > { %v616_v22 = vpop.eup %615 }
  0x3c   : > { %v405_v26 = vadd.f32 1.0, %v616_v22  ;;  %v327_v57 = vmul.f32 0.5, %v326_v46 }
  0x3e   : > { %621 = vlog2.f32 %v405_v26  ;;  %v353_v5 = vadd.f32 %v352_v61, %v327_v57  ;;  %v383_v8 = vadd.f32 %v382_v63, %v327_v57 }
  0x44   : > { %v618_v29 = vpop.eup %617 }
  0x45   : > { %v620_v32 = vpop.eup %619  ;;  %v294_v33 = vadd.f32 %v618_v29, %v293_v25 }
  0x46   : > { %v305_v37 = vadd.f32 %v620_v32, %v556_v27  ;;  %v419_v32 = vld [vmem:[%s747_s9 + $0x1] sm:$0x1] }
  0x47   : > { %v321_v40 = vsub.f32 %v294_v33, %v320_v28  ;;  %v322_v41 = vadd.f32 %v320_v28, %v294_v33 }
  0x48   : > { %v324_v44 = vsub.f32 %v305_v37, %v323_v30  ;;  %v325_v45 = vadd.f32 %v323_v30, %v305_v37 }
  0x49   : > { %v339_v47 = vmin.f32 %v338_v34, %v322_v41  ;;  %v341_v48 = vmax.f32 %v340_v31, %v321_v40  ;;  %v369_v49 = vmin.f32 %v368_v38, %v322_v41  ;;  %v371_v50 = vmax.f32 %v370_v39, %v321_v40 }
  0x4a   : > { %v345_v51 = vmin.f32 %v344_v35, %v325_v45  ;;  %v347_v52 = vmax.f32 %v346_v36, %v324_v44  ;;  %v375_v53 = vmin.f32 %v374_v42, %v325_v45  ;;  %v377_v54 = vmax.f32 %v376_v43, %v324_v44  ;;  %v410_v35 = vld [vmem:[%s747_s9] sm:$0x1] }
  0x4b   : > { %v342_v55 = vsub.f32 %v339_v47, %v341_v48  ;;  %v372_v56 = vsub.f32 %v369_v49, %v371_v50  ;;  %v622_v13 = vpop.eup %621 }
  0x4c   : > { %v348_v58 = vsub.f32 %v345_v51, %v347_v52  ;;  %v378_v59 = vsub.f32 %v375_v53, %v377_v54  ;;  %v407_v18 = vmul.f32 0.6931472, %v622_v13 }
  0x4d   : > { %v343_v60 = vmax.f32 %v342_v55, 0.0  ;;  %v373_v62 = vmax.f32 %v372_v56, 0.0 }
  0x4e   : > { %v349_v1 = vmax.f32 %v348_v58, 0.0  ;;  %v379_v2 = vmax.f32 %v378_v59, 0.0  ;;  %v408_v21 = vadd.f32 %v407_v18, %v400_v17 }
  0x50   : > { %v350_v4 = vmul.f32 %v349_v1, %v343_v60  ;;  %v380_v7 = vmul.f32 %v379_v2, %v373_v62 }
  0x52   : > { %v351_v9 = vmul.f32 1.5, %v350_v4  ;;  %v381_v10 = vmul.f32 1.5, %v380_v7 }
  0x54   : > { %vm354_vm0 = vcmp.gt.f32.partialorder %v351_v9, %v353_v5  ;;  %vm384_vm1 = vcmp.gt.f32.partialorder %v381_v10, %v383_v8 }
  0x55   : > { %v562_v14 = vsel %vm354_vm0, 1.0, %v667_v0  ;;  %v563_v15 = vsel %vm384_vm1, 1.0, %v667_v0 }
  0x56   : > { %v357_v16 = vmax.f32 %v562_v14, 0.0 }
  0x58   : > { %v387_v19 = vmax.f32 %v357_v16, %v563_v15 }
  0x5a   : > { %vm389_vm2 = vcmp.gt.f32.partialorder %v387_v19, 0.5 }
  0x5b   : > { %v392_v22 = vsel %vm389_vm2, 0.0, %v564_v20 }
  0x5c   : > { %v393_v23 = vmax.f32 %v392_v22, %v388_v3 }
  0x5e   : > { %v409_v24 = vmul.f32 %v408_v21, %v393_v23  ;;  %v420_v6 = vrot.slane %v393_v23, 4 }
  0x60   : > { %v411_v25 = vrot.slane %v409_v24, 4  ;;  %v421_v26 = vadd.f32 %v420_v6, %v393_v23 }
  0x62   : > { %v412_v27 = vadd.f32 %v411_v25, %v409_v24  ;;  %v422_v28 = vrot.slane %v421_v26, 2 }
  0x64   : > { %v413_v0 = vrot.slane %v412_v27, 2  ;;  %v423_v29 = vadd.f32 %v422_v28, %v421_v26 }
  0x66   : > { %v414_v30 = vadd.f32 %v413_v0, %v412_v27  ;;  %v424_v31 = vrot.slane %v423_v29, 1 }
  0x68   : > { %v415_v33 = vrot.slane %v414_v30, 1  ;;  %v425_v34 = vadd.f32 %v424_v31, %v423_v29 }
  0x6a   : > { %v416_v36 = vadd.f32 %v415_v33, %v414_v30  ;;  %v426_v37 = vadd.f32 %v425_v34, %v419_v32 }
  0x6c   : > { %v417_v38 = vadd.f32 %v416_v36, %v410_v35  ;;  %427 = vst [vmem:[%s747_s9 + $0x1] sm:$0x1] %v426_v37 }
  0x6e   : > { %418 = vst [vmem:[%s747_s9] sm:$0x1] %v417_v38 }
  0x6f PF: > { %s15_s17 = sadd.s32 1, %s664_s17   ;;  %s837_s15 = smov %s660_s16 }
  0x70   : > { %p12_p2 = scmp.ge.s32.totalorder %s15_s17, 4   ;;  %s838_s16 = smov %s840_s19 }
  0x72   :  { %14 = sbr.rel (!%p12_p2) target bundleno = 2 (0x2), region = 89 }
  0x77   :  { %447 = vsyncpa [#allocation3], 1 }
  0x78   :  { %449 = vsyncpa [#allocation3 + $0x1], 1 }

</bundles_post_ra>
